<compile_context>
chip_gen: v5e
topology: v5e:2x2
jax: 0.10.0
libtpu: 0.0.40
codegen_flags: <defaults>
</compile_context>

<pallas_src>
import functools

import jax
import jax.numpy as jnp
from jax.experimental import pallas as pl
from jax.experimental.pallas import tpu as pltpu


def _focal_loss_kernel(tgt_ref, x_ref, out_ref, *, alpha, gamma, n_total):
    i = pl.program_id(0)
    x = x_ref[...].astype(jnp.float32)          # (TILE_N, C), cast in-kernel
    tgt = tgt_ref[...]                          # (TILE_N, 1) int32
    tile_n, c = x.shape

    # Cross entropy, reduction='none':  ce = logsumexp(x) - x[target]
    cls_id = jax.lax.broadcasted_iota(jnp.int32, (tile_n, c), 1)
    m = jnp.max(x, axis=-1, keepdims=True)                               # (TILE_N, 1)
    lse = jnp.log(jnp.sum(jnp.exp(x - m), axis=-1, keepdims=True)) + m   # (TILE_N, 1)
    tgt_logit = jnp.sum(jnp.where(cls_id == tgt, x, 0.0),
                        axis=-1, keepdims=True)                          # (TILE_N, 1)
    ce = lse - tgt_logit                                                 # (TILE_N, 1)

    # Focal re-weighting.
    pt = jnp.exp(-ce)
    w = 1.0 - pt
    if gamma == 2.0:
        focal = w * w                    # 1 VPU mul, no EUP pow, no -inf hazard
    elif gamma == 1.0:
        focal = w
    elif gamma == 0.0:
        focal = jnp.ones_like(w)
    else:
        focal = jnp.exp(gamma * jnp.log(jnp.maximum(w, 1e-30)))
    loss = alpha * focal * ce                                            # (TILE_N, 1)

    # Zero out padded rows of the last tile (their block data is undefined).
    row = i * tile_n + jax.lax.broadcasted_iota(jnp.int32, (tile_n, 1), 0)
    loss = jnp.where(row < n_total, loss, 0.0)

    partial = jnp.sum(loss)
    # Lane/sublane-aligned partial-sum block (unmasked store); reduced in JAX.
    out_ref[...] = jnp.full((1, 8, 128), partial, dtype=jnp.float32)


def focal_loss(logits, target, *, alpha=1.0, gamma=2.0, reduction="mean",
               tile_n=None):
    """logits: (N, C) any float dtype; target: (N,) int class indices.
    Matches alpha * (1 - exp(-ce))**gamma * ce with 'mean'/'sum' reduction."""
    n, c = logits.shape
    target2d = target.astype(jnp.int32).reshape(n, 1)

    if tile_n is None:
        # Keep one logits block around ~4 MiB so double-buffering stays well
        # inside the default scoped VMEM limit on v5e/v6e/v7x.
        itemsize = jnp.dtype(logits.dtype).itemsize
        rows = max(16, ((4 * 1024 * 1024) // (c * itemsize)) // 16 * 16)
        tile_n = min(512, rows)
    if n <= tile_n:
        tile_n = n                               # single full-extent block
    grid = pl.cdiv(n, tile_n)

    partials = pl.pallas_call(
        functools.partial(_focal_loss_kernel, alpha=float(alpha),
                          gamma=float(gamma), n_total=n),
        grid=(grid,),
        out_shape=jax.ShapeDtypeStruct((grid, 8, 128), jnp.float32),
        in_specs=[
            pl.BlockSpec((tile_n, 1), lambda i: (i, 0)),   # targets (int32)
            pl.BlockSpec((tile_n, c), lambda i: (i, 0)),   # logits (native dtype)
        ],
        out_specs=pl.BlockSpec((1, 8, 128), lambda i: (i, 0, 0)),
        compiler_params=pltpu.CompilerParams(
            dimension_semantics=("parallel",),
        ),
    )(target2d, logits)

    total = jnp.sum(partials[:, 0, 0])
    if reduction == "mean":
        return total / jnp.float32(n)            # divide by global N once
    return total


def _focal_loss_ref(logits, target, *, alpha=1.0, gamma=2.0, reduction="mean"):
    logp = jax.nn.log_softmax(logits.astype(jnp.float32), axis=-1)
    ce = -jnp.take_along_axis(logp, target[:, None].astype(jnp.int32), axis=-1)[:, 0]
    pt = jnp.exp(-ce)
    loss = alpha * (1.0 - pt) ** gamma * ce
    return loss.mean() if reduction == "mean" else loss.sum()


if __name__ == "__main__":
    key = jax.random.PRNGKey(0)
    k1, k2, k3, k4 = jax.random.split(key, 4)

    # Case 1: small single-tile f32 (batch=8, classes=32), mean reduction.
    N, C = 8, 32
    logits = jax.random.normal(k1, (N, C), dtype=jnp.float32)
    target = jax.random.randint(k2, (N,), 0, C, dtype=jnp.int32)
    out = jax.block_until_ready(
        focal_loss(logits, target, alpha=1.0, gamma=2.0, reduction="mean"))
    ref = _focal_loss_ref(logits, target, alpha=1.0, gamma=2.0, reduction="mean")
    assert jnp.allclose(out, ref, rtol=1e-5, atol=1e-6), (out, ref)

    # Case 2: multi-tile bf16 path with a ragged last tile (exercises the
    # grid, native-dtype input, and padded-row masking), sum reduction.
    N2, C2, T2 = 40, 32, 16
    logits2 = jax.random.normal(k3, (N2, C2), dtype=jnp.float32).astype(jnp.bfloat16)
    target2 = jax.random.randint(k4, (N2,), 0, C2, dtype=jnp.int32)
    out2 = jax.block_until_ready(
        focal_loss(logits2, target2, alpha=0.25, gamma=2.0, reduction="sum",
                   tile_n=T2))
    ref2 = _focal_loss_ref(logits2, target2, alpha=0.25, gamma=2.0, reduction="sum")
    assert jnp.allclose(out2, ref2, rtol=1e-4, atol=1e-4), (out2, ref2)

    print("KERNEL_OK")
</pallas_src>

<mosaic_0001>
module attributes {stable_mosaic.version = 11 : i64} {
  func.func @_focal_loss_kernel(%arg0: i32, %arg1: memref<8x1xi32, #tpu.memory_space<vmem>>, %arg2: memref<8x32xf32, #tpu.memory_space<vmem>>, %arg3: memref<1x8x128xf32, #tpu.memory_space<vmem>>) attributes {dimension_semantics = [#tpu.dimension_semantics<parallel>], iteration_bounds = array<i64: 1>, scalar_prefetch = 0 : i64, scratch_operands = 0 : i64, tpu.core_type = #tpu.core_type<tc>, window_params = [{transform_indices = @transform_0, window_bounds = array<i64: 8, 1>}, {transform_indices = @transform_1, window_bounds = array<i64: 8, 32>}, {transform_indices = @transform_2, window_bounds = array<i64: 1, 8, 128>}]} {
    %c0 = arith.constant 0 : index
    %c0_0 = arith.constant 0 : index
    %0 = vector.load %arg2[%c0, %c0_0] : memref<8x32xf32, #tpu.memory_space<vmem>>, vector<8x32xf32>
    %c0_1 = arith.constant 0 : index
    %c0_2 = arith.constant 0 : index
    %1 = vector.load %arg1[%c0_1, %c0_2] : memref<8x1xi32, #tpu.memory_space<vmem>>, vector<8x1xi32>
    %2 = tpu.iota {dimensions = array<i32: 1>} : vector<8x32xi32>
    %cst = arith.constant dense<0xFF800000> : vector<8xf32>
    %3 = vector.multi_reduction <maximumf>, %0, %cst [1] : vector<8x32xf32> to vector<8xf32>
    %4 = vector.shape_cast %3 : vector<8xf32> to vector<8x1xf32>
    %5 = vector.broadcast %4 : vector<8x1xf32> to vector<8x32xf32>
    %6 = arith.subf %0, %5 : vector<8x32xf32>
    %7 = math.exp %6 : vector<8x32xf32>
    %cst_3 = arith.constant dense<0.000000e+00> : vector<8xf32>
    %8 = vector.multi_reduction <add>, %7, %cst_3 [1] : vector<8x32xf32> to vector<8xf32>
    %9 = vector.shape_cast %8 : vector<8xf32> to vector<8x1xf32>
    %10 = math.log %9 : vector<8x1xf32>
    %11 = arith.addf %10, %4 : vector<8x1xf32>
    %12 = vector.broadcast %1 : vector<8x1xi32> to vector<8x32xi32>
    %13 = arith.cmpi eq, %2, %12 : vector<8x32xi32>
    %cst_4 = arith.constant 0.000000e+00 : f32
    %14 = vector.broadcast %cst_4 : f32 to vector<8x32xf32>
    %15 = arith.select %13, %0, %14 : vector<8x32xi1>, vector<8x32xf32>
    %cst_5 = arith.constant dense<0.000000e+00> : vector<8xf32>
    %16 = vector.multi_reduction <add>, %15, %cst_5 [1] : vector<8x32xf32> to vector<8xf32>
    %17 = vector.shape_cast %16 : vector<8xf32> to vector<8x1xf32>
    %18 = arith.subf %11, %17 : vector<8x1xf32>
    %cst_6 = arith.constant 0.000000e+00 : f32
    %19 = vector.broadcast %cst_6 : f32 to vector<8x1xf32>
    %20 = arith.subf %19, %18 : vector<8x1xf32>
    %21 = math.exp %20 : vector<8x1xf32>
    %cst_7 = arith.constant 1.000000e+00 : f32
    %22 = vector.broadcast %cst_7 : f32 to vector<8x1xf32>
    %23 = arith.subf %22, %21 : vector<8x1xf32>
    %24 = arith.mulf %23, %23 : vector<8x1xf32>
    %cst_8 = arith.constant 1.000000e+00 : f32
    %25 = vector.broadcast %cst_8 : f32 to vector<8x1xf32>
    %26 = arith.mulf %25, %24 : vector<8x1xf32>
    %27 = arith.mulf %26, %18 : vector<8x1xf32>
    %c8_i32 = arith.constant 8 : i32
    %28 = arith.muli %arg0, %c8_i32 : i32
    %29 = tpu.iota {dimensions = array<i32: 0>} : vector<8x1xi32>
    %30 = vector.broadcast %28 : i32 to vector<8x1xi32>
    %31 = arith.addi %30, %29 : vector<8x1xi32>
    %c8_i32_9 = arith.constant 8 : i32
    %32 = vector.broadcast %c8_i32_9 : i32 to vector<8x1xi32>
    %33 = arith.cmpi slt, %31, %32 : vector<8x1xi32>
    %cst_10 = arith.constant 0.000000e+00 : f32
    %34 = vector.broadcast %cst_10 : f32 to vector<8x1xf32>
    %35 = arith.select %33, %27, %34 : vector<8x1xi1>, vector<8x1xf32>
    %36 = vector.shape_cast %35 : vector<8x1xf32> to vector<1x8x1xf32>
    %cst_11 = arith.constant dense<0.000000e+00> : vector<1xf32>
    %37 = vector.multi_reduction <add>, %36, %cst_11 [1, 2] : vector<1x8x1xf32> to vector<1xf32>
    %38 = vector.shape_cast %37 : vector<1xf32> to vector<1x1x1xf32>
    %39 = vector.extract %38[0, 0, 0] : f32 from vector<1x1x1xf32>
    %40 = vector.broadcast %39 : f32 to vector<1x8x128xf32>
    %c0_12 = arith.constant 0 : index
    %c0_13 = arith.constant 0 : index
    %c0_14 = arith.constant 0 : index
    %41 = vector.load %arg3[%c0_12, %c0_13, %c0_14] : memref<1x8x128xf32, #tpu.memory_space<vmem>>, vector<1x8x128xf32>
    tpu.vector_store %arg3[%c0_12, %c0_13, %c0_14], %40 {strides = array<i32>} : memref<1x8x128xf32, #tpu.memory_space<vmem>>, vector<1x8x128xf32>,
    return
  }
  func.func @transform_0(%arg0: i32) -> (i32, i32) {
    %c0_i32 = arith.constant 0 : i32
    %c0_i32_0 = arith.constant 0 : i32
    return %arg0, %c0_i32 : i32, i32
  }
  func.func @transform_1(%arg0: i32) -> (i32, i32) {
    %c0_i32 = arith.constant 0 : i32
    %c0_i32_0 = arith.constant 0 : i32
    return %arg0, %c0_i32 : i32, i32
  }
  func.func @transform_2(%arg0: i32) -> (i32, i32, i32) {
    %c0_i32 = arith.constant 0 : i32
    %c0_i32_0 = arith.constant 0 : i32
    %c0_i32_1 = arith.constant 0 : i32
    return %arg0, %c0_i32, %c0_i32_0 : i32, i32, i32
  }
}

</mosaic_0001>

<bundles_post_ra>
// kernel: tpu_custom_call.1
= control target key start
LH: loop header
LB: loop body
LE: loop exit
PB: predicated region body
PF: predicated region fallthrough
CT: control target
= control target key end

     0   :  { %vm16_vm0 = vcmask 261120   ;;  %s146_s0 = inlined_call_operand.vmem [shape: s32[8,1], index: 0, kind: input, shape index: {}]   ;;  %s147_s1 = inlined_call_operand.vmem [shape: f32[8,32], index: 1, kind: input, shape index: {}]   ;;  %s148_s2 = inlined_call_operand.hbm [shape: f32[1,8,128], index: 2, kind: output, shape index: {}]  }
   0x1   :  { %v12_v0 = vld [vmem:[%s147_s1] sm:$0xff] }
   0x2   :  { %7 = vsyncpa [#allocation3], 0  ;;  %v17_v1 = vsel %vm16_vm0, %v12_v0, -inf  ;;  %v117_v2 = vmov 0   ;;  %v13_v3 = vld [vmem:[%s146_s0] sm:$0xff]  ;;  %v14_v9 = vlaneseq  ;;  %vm51_vm2 = vcmask 7168  }
   0x3   :  { %84 = vset.pattern.permute.xlu0 %v117_v2  ;;  %s118_s0 = smov [#allocation2]   ;;  %s71_s15 = sshll.u32 %s148_s2, 4  ;;  %s72_s15 = int_to_ptr.hbm [resolvable:$true] %s71_s15 }
   0x4   :  { %18 = vmax.xlane.f32.xlu0 %v17_v1  ;;  %v15_v10 = vand.u32 127, %v14_v9  ;;  %s69_s1 = sshll.u32 %s118_s0, 4  ;;  %s70_s1 = int_to_ptr.vmem [resolvable:$true] %s69_s1 }
  0x18   :  { %30 = vperm.xlu0 %84, %v13_v3  }
  0x77   :  { %v19_v4 = vpop.xlane.xlu0 %18 }
  0x78   :  { %v20_v5 = vsub.f32 %v12_v0, %v19_v4 }
  0x7a   :  { %v21_v6 = vmul.f32 1.442695, %v20_v5 }
  0x7c   :  { %85 = vpow2.f32 %v21_v6 }
  0x82   :  { %v86_v7 = vpop.eup %85 }
  0x83   :  { %v23_v8 = vsel %vm16_vm0, %v86_v7, 0.0 }
  0x84   :  { %24 = vadd.xlane.f32.xlu1 %v23_v8 }
  0x8a   :  { %v31_v11 = vpop.permute.xlu0 %30 }
  0x8b   :  { %vm32_vm1 = vcmp.eq.s32.totalorder %v15_v10, %v31_v11 }
  0x8c   :  { %v33_v12 = vsel %vm32_vm1, %v12_v0, 0.0 }
  0x8d   :  { %v34_v13 = vsel %vm16_vm0, %v33_v12, 0.0 }
  0x8e   :  { %35 = vadd.xlane.f32.xlu1 %v34_v13 }
  0xf7   :  { %v25_v14 = vpop.xlane.xlu1 %24 }
  0xf8   :  { %87 = vlog2.f32 %v25_v14 }
  0xfe   :  { %v88_v15 = vpop.eup %87 }
  0xff   :  { %v27_v16 = vmul.f32 0.6931472, %v88_v15 }
 0x101   :  { %v28_v17 = vadd.f32 %v27_v16, %v19_v4  ;;  %v36_v18 = vpop.xlane.xlu1 %35 }
 0x103   :  { %v37_v19 = vsub.f32 %v28_v17, %v36_v18 }
 0x105   :  { %v38_v20 = vsub.f32 0.0, %v37_v19 }
 0x107   :  { %v39_v21 = vmul.f32 1.442695, %v38_v20 }
 0x109   :  { %89 = vpow2.f32 %v39_v21 }
 0x10f   :  { %v90_v22 = vpop.eup %89 }
 0x110   :  { %v41_v23 = vsub.f32 1.0, %v90_v22 }
 0x112   :  { %v42_v24 = vmul.f32 %v41_v23, %v41_v23 }
 0x114   :  { %v43_v25 = vmul.f32 %v42_v24, %v37_v19 }
 0x116   :  { %v52_v26 = vsel %vm51_vm2, %v43_v25, 0.0 }
 0x117   :  { %53 = vadd.xlane.f32.xlu2 %v52_v26 }
 0x18a   :  { %v54_v27 = vpop.xlane.xlu2 %53 }
 0x18b   :  { %v55_v28 = vrot.slane %v54_v27, 4 }
 0x18d   :  { %v56_v29 = vadd.f32 %v55_v28, %v54_v27 }
 0x18f   :  { %v57_v30 = vrot.slane %v56_v29, 2 }
 0x191   :  { %v58_v31 = vadd.f32 %v57_v30, %v56_v29 }
 0x193   :  { %v59_v32 = vrot.slane %v58_v31, 1 }
 0x195   :  { %v60_v33 = vadd.f32 %v59_v32, %v58_v31 }
 0x197   :  { %80 = vpush %v60_v33 }
 0x1c8   :  { %s81_s16 = spop %80 }
 0x1c9   :  { %v62_v34 = vstv %s81_s16 }
 0x1ca   :  { %63 = vst [vmem:[#allocation2] sm:$0xff] %v62_v34 }
 0x1cb   :  { %74 = dma.vmem_to_hbm [thread:$0]  %s70_s1, 128, %s72_s15, [#allocation3]  }
 0x1cc   :  { %115 = dma.done.wait [#allocation3], 128  }
 0x1cd   :  { %116 = vsyncadd [#allocation3], 4294967168 }
 0x1ce   :  { %79 = vsyncpa [#allocation3], 1 }

</bundles_post_ra>
